<compile_context>
chip_gen: v7x
topology: tpu7x:2x2x1
jax: 0.10.0
libtpu: 0.0.40
codegen_flags: <defaults>
</compile_context>

<pallas_src>
import functools

import jax
import jax.numpy as jnp
import numpy as np
from jax.experimental import pallas as pl
from jax.experimental.pallas import tpu as pltpu


# --------------------------------------------------------------------------
# Kernel: three fused linear+tanh layers in batch-on-lanes layout.
#   state_ref : (state_dim, tb)    wp_ref : (3, R, C)    bp_ref : (3, R, 1)
#   out_ref   : (action_dim, tb)
# --------------------------------------------------------------------------
def actor_kernel(state_ref, wp_ref, bp_ref, out_ref, *,
                 state_dim, net_width, action_dim, maxaction, act_dtype):
    x = state_ref[...]                                   # (state_dim, tb)

    w1 = wp_ref[0, :net_width, :state_dim]               # folded eff. layer 1
    w2 = wp_ref[1, :net_width, :net_width]
    w3 = wp_ref[2, :action_dim, :net_width]
    b1 = bp_ref[0, :net_width, :]                        # (net_width, 1)
    b2 = bp_ref[1, :net_width, :]
    b3 = bp_ref[2, :action_dim, :]

    a = jnp.tanh((jnp.dot(w1, x, preferred_element_type=jnp.float32) + b1
                  ).astype(act_dtype))
    a = jnp.tanh((jnp.dot(w2, a, preferred_element_type=jnp.float32) + b2
                  ).astype(act_dtype))
    a = jnp.tanh((jnp.dot(w3, a, preferred_element_type=jnp.float32) + b3
                  ).astype(act_dtype))
    out_ref[...] = (a * maxaction).astype(out_ref.dtype)


# --------------------------------------------------------------------------
# Parameter construction (PyTorch-style init, torch Linear layout (out, in)).
# --------------------------------------------------------------------------
def make_params(key, state_dim, action_dim, net_width, user_num):
    def linear(key, in_f, out_f):
        k1, k2 = jax.random.split(key)
        bound = 1.0 / jnp.sqrt(in_f)
        w = jax.random.uniform(k1, (out_f, in_f), jnp.float32, -bound, bound)
        b = jax.random.uniform(k2, (out_f,), jnp.float32, -bound, bound)
        return w, b

    keys = jax.random.split(key, 5)
    l1_in = state_dim - 3 + user_num * 2
    return {
        "fc_t": linear(keys[0], 1, user_num),
        "fc_loc": linear(keys[1], 2, user_num),
        "l1": linear(keys[2], l1_in, net_width),
        "l2": linear(keys[3], net_width, net_width),
        "l3": linear(keys[4], net_width, action_dim),
    }


# --------------------------------------------------------------------------
# One-time folding + packing (hoisted out of the forward).
#
# In (out,in) layout:
#   h1 = W1 @ [t; loc; rest] + b1,  t = Wt@s_t + bt,  loc = Wloc@s_loc + bloc
#      = W_eff @ state^T + b_eff
# with state column order rest | loc | t (rest = state[:, :-3], ...):
#   W_eff = [ W1_s | W1_loc@Wloc | W1_t@Wt ],  b_eff = W1_t@bt + W1_loc@bloc + b1
# All three weights / biases packed into one buffer each.
# --------------------------------------------------------------------------
def prepare_actor_params(params, user_num, dtype=jnp.float32):
    wt, bt = [np.asarray(x, np.float32) for x in params["fc_t"]]      # (u,1),(u,)
    wloc, bloc = [np.asarray(x, np.float32) for x in params["fc_loc"]]  # (u,2),(u,)
    w1, b1 = [np.asarray(x, np.float32) for x in params["l1"]]        # (nw,l1in),(nw,)
    w2, b2 = [np.asarray(x, np.float32) for x in params["l2"]]        # (nw,nw),(nw,)
    w3, b3 = [np.asarray(x, np.float32) for x in params["l3"]]        # (ad,nw),(ad,)

    net_width = w1.shape[0]
    action_dim = w3.shape[0]
    u = user_num
    w1_t = w1[:, :u]                 # columns multiplying t
    w1_loc = w1[:, u:2 * u]          # columns multiplying loc
    w1_s = w1[:, 2 * u:]             # columns multiplying state[:, :-3]
    state_dim = w1_s.shape[1] + 3

    w_eff = np.concatenate([w1_s, w1_loc @ wloc, w1_t @ wt], axis=1)  # (nw, sd)
    b_eff = w1_t @ bt + w1_loc @ bloc + b1                            # (nw,)

    R = max(net_width, action_dim)
    C = max(state_dim, net_width)
    wp = np.zeros((3, R, C), np.float32)
    bp = np.zeros((3, R, 1), np.float32)
    wp[0, :net_width, :state_dim] = w_eff
    wp[1, :net_width, :net_width] = w2
    wp[2, :action_dim, :net_width] = w3
    bp[0, :net_width, 0] = b_eff
    bp[1, :net_width, 0] = b2
    bp[2, :action_dim, 0] = b3

    return {
        "wp": jnp.asarray(wp, dtype),
        "bp": jnp.asarray(bp, dtype),
        "state_dim": state_dim,
        "net_width": net_width,
        "action_dim": action_dim,
        "dtype": jnp.dtype(dtype),
    }


def default_stream_dtype():
    """bf16 streaming on v6e / v7x (bf16 VPU/EUP + bandwidth), f32 elsewhere."""
    try:
        kind = jax.devices()[0].device_kind.lower()
    except Exception:
        return jnp.float32
    if ("v6" in kind) or ("v7" in kind) or ("7x" in kind):
        return jnp.bfloat16
    return jnp.float32


_MAX_TB = 16384          # lane-axis batch tile cap (a few MiB double-buffered)
_MIN_GRID_BATCH = 256


def _batch_tile(B):
    """Batch tile (lane axis). None => gridless latency path (tiny B only)."""
    if B < _MIN_GRID_BATCH:
        return None
    # Guarantee >= 2 grid steps so ("parallel",) can shard across v7x's 2 TCs.
    half = pl.cdiv(B, 2)
    tb = 128 * pl.cdiv(half, 128)
    return min(tb, _MAX_TB)


# --------------------------------------------------------------------------
# Forward wrapper.
# --------------------------------------------------------------------------
def actor_forward(state, prepared, *, maxaction):
    B, state_dim = state.shape
    assert state_dim == prepared["state_dim"]
    nw = prepared["net_width"]
    ad = prepared["action_dim"]
    wp, bp = prepared["wp"], prepared["bp"]
    sdt = prepared["dtype"]

    # Batch goes on the lane axis: lane-dense stores / full vreg occupancy.
    x_t = state.astype(sdt).T                              # (state_dim, B)

    flops = 2 * B * (state_dim * nw + nw * nw + nw * ad)
    transcendentals = B * (2 * nw + ad)
    itemsize = jnp.dtype(sdt).itemsize
    bytes_accessed = int(B * state_dim * itemsize
                         + wp.size * wp.dtype.itemsize
                         + bp.size * bp.dtype.itemsize
                         + B * ad * itemsize)
    cost = pl.CostEstimate(flops=int(flops),
                           transcendentals=int(transcendentals),
                           bytes_accessed=bytes_accessed)

    # TODO(synk): if maxaction varies at runtime, pass it as an SMEM scalar
    # instead of a Python static (each distinct value recompiles).
    kernel = functools.partial(actor_kernel,
                               state_dim=state_dim, net_width=nw,
                               action_dim=ad, maxaction=float(maxaction),
                               act_dtype=sdt)

    tb = _batch_tile(B)
    if tb is None:
        # Tiny batch: gridless, everything VMEM-resident (a grid would only
        # add ~0.35us/step overhead at this size).
        vmem = pl.BlockSpec(memory_space=pltpu.MemorySpace.VMEM)
        out_t = pl.pallas_call(
            kernel,
            out_shape=jax.ShapeDtypeStruct((ad, B), sdt),
            in_specs=[vmem, vmem, vmem],
            out_specs=vmem,
            cost_estimate=cost,
        )(x_t, wp, bp)
        return out_t.T.astype(jnp.float32)

    # Pad batch up to a tile multiple; never hold an unbounded state in VMEM.
    B_pad = tb * pl.cdiv(B, tb)
    if B_pad != B:
        x_t = jnp.pad(x_t, ((0, 0), (0, B_pad - B)))

    rup = lambda x, m: ((x + m - 1) // m) * m
    tile_bytes = (rup(state_dim, 8) + rup(ad, 8)) * tb * itemsize   # in + out
    act_bytes = 3 * rup(nw, 8) * tb * 4                              # f32 temps
    param_bytes = wp.size * wp.dtype.itemsize + bp.size * bp.dtype.itemsize
    need = 2 * tile_bytes + act_bytes + 4 * param_bytes + (2 << 20)
    vmem_limit = int(min(max(need, 8 << 20), 40 << 20))

    out_t = pl.pallas_call(
        kernel,
        out_shape=jax.ShapeDtypeStruct((ad, B_pad), sdt),
        grid=(B_pad // tb,),
        in_specs=[
            pl.BlockSpec((state_dim, tb), lambda i: (0, i)),   # streamed state
            pl.BlockSpec(wp.shape, lambda i: (0, 0, 0)),       # VMEM-resident
            pl.BlockSpec(bp.shape, lambda i: (0, 0, 0)),       # VMEM-resident
        ],
        out_specs=pl.BlockSpec((ad, tb), lambda i: (0, i)),
        cost_estimate=cost,
        compiler_params=pltpu.CompilerParams(
            dimension_semantics=("parallel",),
            vmem_limit_bytes=vmem_limit),
    )(x_t, wp, bp)
    return out_t[:, :B].T.astype(jnp.float32)


# --------------------------------------------------------------------------
# Pure-JAX reference mirroring the PyTorch forward exactly (unfolded).
# --------------------------------------------------------------------------
def actor_reference(state, params, *, maxaction):
    f32 = jnp.float32
    s = state.astype(f32)

    def lin(x, wb):
        w, b = wb
        return x @ jnp.asarray(w, f32).T + jnp.asarray(b, f32)

    t = lin(s[:, -1:], params["fc_t"])
    loc = lin(s[:, -3:-1], params["fc_loc"])
    a = jnp.concatenate([t, loc, s[:, :-3]], axis=1)
    a = jnp.tanh(lin(a, params["l1"]))
    a = jnp.tanh(lin(a, params["l2"]))
    a = jnp.tanh(lin(a, params["l3"])) * maxaction
    return a


if __name__ == "__main__":
    user_num = 5
    state_dim = 16
    action_dim = 4
    net_width = 32
    maxaction = 2.0

    key = jax.random.PRNGKey(0)
    k_params, k_small, k_mid, k_odd = jax.random.split(key, 4)
    params = make_params(k_params, state_dim, action_dim, net_width, user_num)

    def check(B, kseed, prepared, atol, rtol):
        s = jax.random.normal(kseed, (B, state_dim), jnp.float32)
        out = jax.block_until_ready(
            actor_forward(s, prepared, maxaction=maxaction))
        ref = actor_reference(s, params, maxaction=maxaction)
        assert out.shape == (B, action_dim)
        err = float(jnp.max(jnp.abs(out - ref)))
        assert jnp.allclose(out, ref, atol=atol, rtol=rtol), (
            f"B={B} max abs err {err}")

    # f32 path (tight correctness): one-time fold + pack.
    prep_f32 = prepare_actor_params(params, user_num, dtype=jnp.float32)
    check(8, k_small, prep_f32, 2e-5, 2e-5)      # gridless latency path
    check(512, k_mid, prep_f32, 2e-5, 2e-5)      # gridded: tb=256, grid=2
    check(300, k_odd, prep_f32, 2e-5, 2e-5)      # non-multiple batch -> padded

    # Generation-default streaming dtype (bf16 on v6e/v7x, f32 on v5e etc.).
    sdt = default_stream_dtype()
    prep_auto = prepare_actor_params(params, user_num, dtype=sdt)
    loose = jnp.dtype(sdt) == jnp.dtype(jnp.bfloat16)
    tol = 0.1 if loose else 2e-5
    check(512, k_mid, prep_auto, tol, tol)

    print("KERNEL_OK")
</pallas_src>

<mosaic_0001>
module attributes {stable_mosaic.version = 11 : i64} {
  func.func @actor_kernel(%arg0: memref<16x8xf32, #tpu.memory_space<vmem>>, %arg1: memref<3x32x32xf32, #tpu.memory_space<vmem>>, %arg2: memref<3x32x1xf32, #tpu.memory_space<vmem>>, %arg3: memref<4x8xf32, #tpu.memory_space<vmem>>) attributes {dimension_semantics = [], scalar_prefetch = 0 : i64, scratch_operands = 0 : i64, tpu.core_type = #tpu.core_type<tc>} {
    %c0 = arith.constant 0 : index
    %c0_0 = arith.constant 0 : index
    %0 = vector.load %arg0[%c0, %c0_0] : memref<16x8xf32, #tpu.memory_space<vmem>>, vector<16x8xf32>
    %c0_1 = arith.constant 0 : index
    %c0_2 = arith.constant 0 : index
    %c0_3 = arith.constant 0 : index
    %1 = vector.load %arg1[%c0_1, %c0_2, %c0_3] : memref<3x32x32xf32, #tpu.memory_space<vmem>>, vector<1x32x16xf32>
    %2 = vector.shape_cast %1 : vector<1x32x16xf32> to vector<32x16xf32>
    %c1 = arith.constant 1 : index
    %c0_4 = arith.constant 0 : index
    %c0_5 = arith.constant 0 : index
    %3 = vector.load %arg1[%c1, %c0_4, %c0_5] : memref<3x32x32xf32, #tpu.memory_space<vmem>>, vector<1x32x32xf32>
    %4 = vector.shape_cast %3 : vector<1x32x32xf32> to vector<32x32xf32>
    %c2 = arith.constant 2 : index
    %c0_6 = arith.constant 0 : index
    %c0_7 = arith.constant 0 : index
    %5 = vector.load %arg1[%c2, %c0_6, %c0_7] : memref<3x32x32xf32, #tpu.memory_space<vmem>>, vector<1x4x32xf32>
    %6 = vector.shape_cast %5 : vector<1x4x32xf32> to vector<4x32xf32>
    %c0_8 = arith.constant 0 : index
    %c0_9 = arith.constant 0 : index
    %c0_10 = arith.constant 0 : index
    %7 = vector.load %arg2[%c0_8, %c0_9, %c0_10] : memref<3x32x1xf32, #tpu.memory_space<vmem>>, vector<1x32x1xf32>
    %8 = vector.shape_cast %7 : vector<1x32x1xf32> to vector<32x1xf32>
    %c1_11 = arith.constant 1 : index
    %c0_12 = arith.constant 0 : index
    %c0_13 = arith.constant 0 : index
    %9 = vector.load %arg2[%c1_11, %c0_12, %c0_13] : memref<3x32x1xf32, #tpu.memory_space<vmem>>, vector<1x32x1xf32>
    %10 = vector.shape_cast %9 : vector<1x32x1xf32> to vector<32x1xf32>
    %c2_14 = arith.constant 2 : index
    %c0_15 = arith.constant 0 : index
    %c0_16 = arith.constant 0 : index
    %11 = vector.load %arg2[%c2_14, %c0_15, %c0_16] : memref<3x32x1xf32, #tpu.memory_space<vmem>>, vector<1x4x1xf32>
    %12 = vector.shape_cast %11 : vector<1x4x1xf32> to vector<4x1xf32>
    %cst = arith.constant dense<0.000000e+00> : vector<32x8xf32>
    %13 = tpu.matmul %2, %0, %cst {dimension_numbers = #tpu.dot_dimension_numbers<[1], [0], [0], [1], [0, 0, 1, 1], [], []>} : vector<32x16xf32>, vector<16x8xf32>, vector<32x8xf32> -> vector<32x8xf32>
    %14 = vector.broadcast %8 : vector<32x1xf32> to vector<32x8xf32>
    %15 = arith.addf %13, %14 : vector<32x8xf32>
    %16 = math.tanh %15 : vector<32x8xf32>
    %cst_17 = arith.constant dense<0.000000e+00> : vector<32x8xf32>
    %17 = tpu.matmul %4, %16, %cst_17 {dimension_numbers = #tpu.dot_dimension_numbers<[1], [0], [0], [1], [0, 0, 1, 1], [], []>} : vector<32x32xf32>, vector<32x8xf32>, vector<32x8xf32> -> vector<32x8xf32>
    %18 = vector.broadcast %10 : vector<32x1xf32> to vector<32x8xf32>
    %19 = arith.addf %17, %18 : vector<32x8xf32>
    %20 = math.tanh %19 : vector<32x8xf32>
    %cst_18 = arith.constant dense<0.000000e+00> : vector<4x8xf32>
    %21 = tpu.matmul %6, %20, %cst_18 {dimension_numbers = #tpu.dot_dimension_numbers<[1], [0], [0], [1], [0, 0, 1, 1], [], []>} : vector<4x32xf32>, vector<32x8xf32>, vector<4x8xf32> -> vector<4x8xf32>
    %22 = vector.broadcast %12 : vector<4x1xf32> to vector<4x8xf32>
    %23 = arith.addf %21, %22 : vector<4x8xf32>
    %24 = math.tanh %23 : vector<4x8xf32>
    %cst_19 = arith.constant 2.000000e+00 : f32
    %25 = vector.broadcast %cst_19 : f32 to vector<4x8xf32>
    %26 = arith.mulf %24, %25 : vector<4x8xf32>
    %c0_20 = arith.constant 0 : index
    %c0_21 = arith.constant 0 : index
    %27 = vector.load %arg3[%c0_20, %c0_21] : memref<4x8xf32, #tpu.memory_space<vmem>>, vector<4x8xf32>
    tpu.vector_store %arg3[%c0_20, %c0_21], %26 {strides = array<i32>} : memref<4x8xf32, #tpu.memory_space<vmem>>, vector<4x8xf32>,
    return
  }
}

</mosaic_0001>

<bundles_post_ra>
// kernel: tpu_custom_call.1
= control target key start
LH: loop header
LB: loop body
LE: loop exit
PB: predicated region body
PF: predicated region fallthrough
CT: control target
= control target key end

     0   :  { %vm59_vm0 = vcmask 130048   ;;  %v519_v4 = vmov 0   ;;  %s625_s0 = inlined_call_operand.vmem [shape: f32[16,8], index: 0, kind: input, shape index: {}]   ;;  %s626_s1 = inlined_call_operand.vmem [shape: f32[3,32,32], index: 1, kind: input, shape index: {}]   ;;  %s627_s2 = inlined_call_operand.vmem [shape: f32[3,32,1], index: 2, kind: input, shape index: {}]   ;;  %s628_s3 = inlined_call_operand.hbm [shape: f32[4,8], index: 3, kind: output, shape index: {}]  }
   0x1   :  { %v15_v0 = vld [vmem:[%s625_s0] sm:$0xff]  ;;  %v16_v1 = vld [vmem:[%s625_s0 + $0x8] sm:$0xff]  ;;  %475 = vset.pattern.permute.xlu0 %v519_v4  ;;  %476 = vset.pattern.permute.xlu1 %v519_v4  ;;  %v30_v6 = vld [vmem:[%s627_s2 + $0x10] sm:$0xff] }
   0x2   :  { %v17_v2 = vld [vmem:[%s626_s1] sm:$0xff]  ;;  %v452_v3 = vpack.c.bf16 %v16_v1, %v15_v0  ;;  %v18_v7 = vld [vmem:[%s626_s1 + $0x8] sm:$0xff]  ;;  %51 = vperm.xlu1 %476, %v30_v6   ;;  %v19_v9 = vld [vmem:[%s626_s1 + $0x10] sm:$0xff] }
   0x3   :  { %421 = vmatprep.mubr.msk.f32.mxu0 %vm59_vm0, %v17_v2  ;;  %v28_v5 = vld [vmem:[%s627_s2] sm:$0xff]  ;;  %v29_v8 = vld [vmem:[%s627_s2 + $0x8] sm:$0xff]  ;;  %v31_v10 = vld [vmem:[%s627_s2 + $0x18] sm:$0xff] }
   0x4   :  { %453 = vmatprep.subr.bf16.mxu0 %v452_v3  ;;  %41 = vperm.xlu0 %475, %v28_v5  }
   0x5   :  { %455 = vmatpush3.bf16.msra.mxu0 %v452_v3 }
   0x6   :  { %8 = vsyncpa [#allocation3], 0  ;;  %v20_v11 = vld [vmem:[%s626_s1 + $0x18] sm:$0xff]  ;;  %v384_v12 = vld [vmem:[%s627_s2 + $0x20] sm:$0xff]  ;;  %56 = vperm.xlu1 %476, %v31_v10   ;;  %vm181_vm1 = vcmask 261120   ;;  %v520_v39 = vmov 0.0|0.0  }
   0x7   :  { %v385_v13 = vld [vmem:[%s627_s2 + $0x28] sm:$0xff]  ;;  %v386_v14 = vld [vmem:[%s627_s2 + $0x30] sm:$0xff]  ;;  %v387_v15 = vld [vmem:[%s627_s2 + $0x38] sm:$0xff]  ;;  %464 = vmatprep.subr.bf16.mxu0 %v520_v39  ;;  %vm521_vm2 = vmmov 0   ;;  %v522_v40 = vmov 0.0   ;;  %s523_s22 = smov [#allocation2]  }
   0x8   :  { %422 = vmatmul.mubr.msk.f32.vlgmr.msra.gmra.mrb[0].mxu0 %vm59_vm0, %v18_v7  ;;  %46 = vperm.xlu0 %475, %v29_v8   ;;  %v388_v16 = vld [vmem:[%s627_s2 + $0x40] sm:$0xf]  ;;  %v380_v36 = vld [vmem:[%s626_s1 + $0x28] sm:$0xff]  ;;  %v381_v37 = vld [vmem:[%s626_s1 + $0x30] sm:$0xff]  ;;  %s371_s23 = sshll.u32 %s523_s22, 4  ;;  %vm363_vm3 = vcmask 60416   ;;  %s372_s23 = int_to_ptr.vmem [resolvable:$true] %s371_s23 }
   0x9   :  { %424 = vmatprep.mubr.msk.f32.mxu0 %vm59_vm0, %v19_v9  ;;  %v379_v17 = vld [vmem:[%s626_s1 + $0x20] sm:$0xff]  ;;  %v382_v38 = vld [vmem:[%s626_s1 + $0x38] sm:$0xff]  ;;  %s495_s24 = scalar_lea.vmem %s372_s23, 64  ;;  %p500_p1 = scmp.lt.s32.totalorder %s372_s23, %s372_s23 }
   0xa   :  { %168 = vperm.xlu1 %476, %v385_v13   ;;  %435 = vmatprep.mubr.msk.f32.mxu1 %vm181_vm1, %v379_v17  ;;  %v383_v59 = vld [vmem:[%s626_s1 + $0x40] sm:$0xf]  ;;  %p496_p0 = scmp.ne.s32.totalorder %s372_s23, %s495_s24  ;;  %p501_p2 = scmp.lt.s32.totalorder %s495_s24, %s495_s24 }
   0xc   :  { %425 = vmatmul.mubr.msk.f32.gmra.mrb[2].mxu0 %vm59_vm0, %v20_v11  ;;  %163 = vperm.xlu0 %475, %v384_v12   ;;  %p502_p3 = por %p501_p2, %p500_p1 }
   0xd   :  { %449 = vmatprep.mubr.msk.f32.mxu0 %vm521_vm2, %v522_v40 }
   0xe   :  { %178 = vperm.xlu1 %476, %v387_v15   ;;  %p503_p4 = pnand %p502_p3, %p496_p0 }
  0x10   :  { %173 = vperm.xlu0 %475, %v386_v14  }
  0x14   :  { %285 = vperm.xlu0 %475, %v388_v16  }
  0x81   :  { %v52_v19 = vpop.permute.xlu1 %51 }
  0x83   :  { %v42_v18 = vpop.permute.xlu0 %41 }
  0x85   :  { %v57_v25 = vpop.permute.xlu1 %56 }
  0x87   :  { %v47_v20 = vpop.permute.xlu0 %46 }
  0x89   :  { %v169_v41 = vpop.permute.xlu1 %168 }
  0x8b   :  { %v164_v42 = vpop.permute.xlu0 %163 }
  0x8d   :  { %v179_v47 = vpop.permute.xlu1 %178 }
  0x8f   :  { %v174_v49 = vpop.permute.xlu0 %173 }
  0x93   :  { %v286_v60 = vpop.permute.xlu0 %285 }
  0xdb   :  { %v423_v21 = vpop.f32.mrb[0].mxu0 }
  0xdc   :  { %v144_v22 = vadd.f32 %v423_v21, %v47_v20  ;;  %v138_v23 = vpop.f32.mrb[1].mxu0 }
  0xdd   :  { %v139_v24 = vadd.f32 %v138_v23, %v42_v18 }
  0xde   :  { %477 = vtanh.f32 %v144_v22 }
  0xdf   :  { %479 = vtanh.f32 %v139_v24  ;;  %v426_v26 = vpop.f32.mrb[2].mxu0 }
  0xe0   :  { %v154_v27 = vadd.f32 %v426_v26, %v57_v25  ;;  %v148_v28 = vpop.f32.mrb[3].mxu0 }
  0xe1   :  { %v149_v29 = vadd.f32 %v148_v28, %v52_v19 }
  0xe2   :  { %481 = vtanh.f32 %v154_v27 }
  0xe3   :  { %483 = vtanh.f32 %v149_v29 }
  0xe8   :  { %v478_v30 = vpop.eup %477 }
  0xe9   :  { %v480_v31 = vpop.eup %479 }
  0xea   :  { %v456_v32 = vpack.c.bf16 %v478_v30, %v480_v31 }
  0xec   :  { %v482_v33 = vpop.eup %481  ;;  %457 = vmatprep.subr.bf16.mxu1 %v456_v32 }
  0xed   :  { %v484_v34 = vpop.eup %483  ;;  %459 = vmatpush3.bf16.msra.mxu1 %v456_v32 }
  0xee   :  { %v460_v35 = vpack.c.bf16 %v482_v33, %v484_v34 }
  0xf0   :  { %461 = vmatprep.subr.bf16.mxu1 %v460_v35 }
  0xf1   :  { %463 = vmatpush3.bf16.msra.mxu1 %v460_v35 }
  0xf4   :  { %436 = vmatmul.mubr.msk.f32.vlgmr.msra.gmra.mrb[0].mxu1 %vm181_vm1, %v380_v36 }
  0xf5   :  { %438 = vmatprep.mubr.msk.f32.mxu1 %vm181_vm1, %v381_v37 }
  0xf8   :  { %439 = vmatmul.mubr.msk.f32.gmra.mrb[2].mxu1 %vm181_vm1, %v382_v38 }
 0x1c7   :  { %v437_v43 = vpop.f32.mrb[0].mxu1 }
 0x1c8   :  { %v266_v44 = vadd.f32 %v437_v43, %v169_v41  ;;  %v260_v45 = vpop.f32.mrb[1].mxu1 }
 0x1c9   :  { %v261_v46 = vadd.f32 %v260_v45, %v164_v42 }
 0x1ca   :  { %485 = vtanh.f32 %v266_v44 }
 0x1cb   :  { %487 = vtanh.f32 %v261_v46  ;;  %v440_v48 = vpop.f32.mrb[2].mxu1 }
 0x1cc   :  { %v276_v50 = vadd.f32 %v440_v48, %v179_v47  ;;  %v270_v51 = vpop.f32.mrb[3].mxu1 }
 0x1cd   :  { %v271_v52 = vadd.f32 %v270_v51, %v174_v49 }
 0x1ce   :  { %489 = vtanh.f32 %v276_v50 }
 0x1cf   :  { %491 = vtanh.f32 %v271_v52 }
 0x1d4   :  { %v486_v53 = vpop.eup %485 }
 0x1d5   :  { %v488_v54 = vpop.eup %487 }
 0x1d6   :  { %v465_v55 = vpack.c.bf16 %v486_v53, %v488_v54 }
 0x1d8   :  { %v490_v56 = vpop.eup %489  ;;  %466 = vmatpush3.bf16.msra.mxu0 %v465_v55 }
 0x1d9   :  { %v492_v57 = vpop.eup %491  ;;  %467 = vmatprep.subr.bf16.mxu0 %v520_v39 }
 0x1da   :  { %v468_v58 = vpack.c.bf16 %v490_v56, %v492_v57 }
 0x1dc   :  { %469 = vmatpush3.bf16.msra.mxu0 %v468_v58 }
 0x1df   :  { %450 = vmatmul.mubr.msk.f32.vlgmr.msra.gmra.mrb[4].mxu0 %vm181_vm1, %v383_v59 }
 0x2b2   :  { %v357_v61 = vpop.f32.mrb[4].mxu0 }
 0x2b3   :  { %v358_v62 = vadd.f32 %v357_v61, %v286_v60  ;;  %v451_v63 = vpop.f32.mrb[5].mxu0 }
 0x2b5   :  { %493 = vtanh.f32 %v358_v62 }
 0x2bf   :  { %v494_v0 = vpop.eup %493 }
 0x2c0   :  { %v362_v1 = vmul.f32 2.0, %v494_v0 }
 0x2c2   :  { %364 = vst.msk [vmem:[#allocation2] sm:$0xf] %vm363_vm3, %v362_v1 }
 0x2c3   :  { %506 = shalt.err (!%p503_p4)
}
 0x2c4   :  { %s507_s26 = scalar_lea.hbm %s628_s3, 64 }
 0x2c5   :  { %p508_p5 = scmp.ne.s32.totalorder %s628_s3, %s507_s26  ;;  %p511_p6 = scmp.lt.u32.totalorder %s507_s26, %s628_s3 }
 0x2c7   :  { %p513_p7 = pnand %p511_p6, %p508_p5 }
 0x2c9   :  { %516 = shalt.err (!%p513_p7)
}
 0x2ca   :  { %374 = dma.vmem_to_hbm [thread:$0]  %s372_s23, 64, %s628_s3, [#allocation3]  }
 0x2cb   :  { %517 = dma.done.wait [#allocation3], 64  }
 0x2cc   :  { %518 = vsyncadd [#allocation3], 4294967232 }
 0x2cd   :  { %378 = vsyncpa [#allocation3], 1 }

</bundles_post_ra>
